<compile_context>
chip_gen: v7x
topology: tpu7x:2x2x1
jax: 0.10.0
libtpu: 0.0.40
codegen_flags: <defaults>
</compile_context>

<pallas_src>
import functools

import jax
import jax.numpy as jnp
import numpy as np
from jax import lax
from jax.experimental import pallas as pl
from jax.experimental.pallas import tpu as pltpu


def _round_up(x, m):
    return ((x + m - 1) // m) * m


def _apply_nonlinear(g, nonlinear):
    if nonlinear == "relu":
        return jnp.maximum(g, 0.0)
    if nonlinear == "tanh":
        return jnp.tanh(g)
    if nonlinear == "sigmoid":
        return jax.nn.sigmoid(g)
    if nonlinear == "relutanh":
        return jnp.tanh(jnp.maximum(g, 0.0))
    return g  # identity


# ---------------------------------------------------------------------------
# Fused kernel (small/medium vocab): build the transposed blended table once in
# a VMEM scratch, then gather table columns per token via a one-hot MXU matmul.
#   tbl (R, Vpad)  = beta * V^T + (1 - beta) * nonlinear(W_gen^T @ word_embed^T)
#   out (R, tm)    = tbl @ onehot(Vpad, tm)           (exact for 0/1 weights, f32)
# ---------------------------------------------------------------------------
def _fused_gather_kernel(ids_ref, we_t_ref, v_t_ref, w_t_ref, beta_ref, omb_ref,
                         out_ref, tbl_ref, *, nonlinear):
    @pl.when(pl.program_id(0) == 0)   # grid axis is "arbitrary" => this step runs first
    def _():
        g = jnp.dot(w_t_ref[...], we_t_ref[...],
                    preferred_element_type=jnp.float32)            # (R, Vpad)
        g = _apply_nonlinear(g, nonlinear)
        tbl_ref[...] = v_t_ref[...] * beta_ref[...] + g * omb_ref[...]

    ids = ids_ref[...]                                             # (1, tm) int32, lane-dense
    vpad = tbl_ref.shape[1]
    tm = ids.shape[1]
    iota = lax.broadcasted_iota(jnp.int32, (vpad, tm), 0)
    onehot = (iota == ids).astype(jnp.float32)                     # (Vpad, tm)
    out_ref[...] = jnp.dot(tbl_ref[...], onehot,
                           preferred_element_type=jnp.float32).astype(out_ref.dtype)


# ---------------------------------------------------------------------------
# Fallback kernel (large vocab): lane-dense transposed table, gridded over vocab
# lane-tiles; the per-token gather is then done by XLA (jnp.take) on the table.
# ---------------------------------------------------------------------------
def _table_t_kernel(w_t_ref, we_t_ref, v_t_ref, beta_ref, omb_ref, tbl_ref, *, nonlinear):
    g = jnp.dot(w_t_ref[...], we_t_ref[...], preferred_element_type=jnp.float32)  # (R, tvl)
    g = _apply_nonlinear(g, nonlinear)
    tbl_ref[...] = (v_t_ref[...] * beta_ref[...] + g * omb_ref[...]).astype(tbl_ref.dtype)


@functools.partial(
    jax.jit,
    static_argnames=("max_len", "nonlinear", "tile_m", "tile_v", "max_fused_vocab"))
def embed_aggregate(inp, word_embed, V_embed, W_gen, beta_vec, *,
                    max_len, nonlinear="relutanh",
                    tile_m=1024, tile_v=512, max_fused_vocab=2048):
    """EmbedAggregator.forward (WordEmbedding path), fully jittable."""
    B, L1 = inp.shape
    L = min(int(max_len), L1)            # static truncation (no host sync in the hot path)
    inp = inp[:, :L]

    Vocab, D = word_embed.shape
    R = V_embed.shape[1]
    out_dtype = V_embed.dtype

    M = B * L
    tm = max(128, (int(tile_m) // 128) * 128)      # lane-dense token tile
    tm = min(tm, _round_up(M, 128))
    M_pad = _round_up(M, tm)

    # Transposed (lane-dense) parameter views; one-time layout plumbing in XLA.
    f32 = jnp.float32
    we_t = word_embed.astype(f32).T                # (D, Vocab)
    v_t = V_embed.astype(f32).T                    # (R, Vocab)
    w_t = W_gen.astype(f32).T                      # (R, D)
    beta2 = beta_vec.astype(f32).reshape(R, 1)
    omb2 = 1.0 - beta2                             # hoisted (1 - beta)

    ids = inp.reshape(M).astype(jnp.int32)

    # ------------------------------------------------------------------
    # Path A (default at these sizes): single fused kernel, one-hot MXU gather.
    # Gated on vocab size and a conservative double-buffered VMEM estimate.
    # ------------------------------------------------------------------
    Vpad_a = _round_up(Vocab, 128)
    est = 4 * (2 * D * Vpad_a            # word_embed^T (x2 buffers)
               + 2 * R * Vpad_a          # V_embed^T
               + 2 * R * max(D, 128)     # W_gen^T (lane padded)
               + 4 * R * 128             # beta / (1-beta) (lane padded)
               + 2 * 8 * tm              # ids block (sublane padded)
               + 2 * R * tm              # out block
               + R * Vpad_a              # table scratch
               + 2 * Vpad_a * tm)        # one-hot + iota temporaries
    use_fused = (Vpad_a <= int(max_fused_vocab)) and (est <= (24 << 20))

    if use_fused:
        pad_v = Vpad_a - Vocab
        we_p = jnp.pad(we_t, ((0, 0), (0, pad_v))) if pad_v else we_t
        v_p = jnp.pad(v_t, ((0, 0), (0, pad_v))) if pad_v else v_t
        ids_p = jnp.pad(ids, (0, M_pad - M)) if M_pad != M else ids  # pads gather row 0; sliced off
        ids2 = ids_p.reshape(1, M_pad)

        cost = pl.CostEstimate(
            flops=2 * R * Vpad_a * M_pad + 2 * R * D * Vpad_a,
            transcendentals=(R * Vpad_a) if nonlinear in ("tanh", "sigmoid", "relutanh") else 0,
            bytes_accessed=4 * (M_pad + D * Vpad_a + 2 * R * Vpad_a + R * D + R * M_pad),
        )
        vmem_limit = int(min(48 << 20, max(16 << 20, 2 * est)))

        out_t = pl.pallas_call(
            functools.partial(_fused_gather_kernel, nonlinear=nonlinear),
            out_shape=jax.ShapeDtypeStruct((R, M_pad), out_dtype),
            grid_spec=pltpu.PrefetchScalarGridSpec(
                num_scalar_prefetch=0,
                grid=(M_pad // tm,),
                in_specs=[
                    pl.BlockSpec((1, tm), lambda i: (0, i)),        # token ids (lane-dense)
                    pl.BlockSpec((D, Vpad_a), lambda i: (0, 0)),    # word_embed^T (resident)
                    pl.BlockSpec((R, Vpad_a), lambda i: (0, 0)),    # V_embed^T   (resident)
                    pl.BlockSpec((R, D), lambda i: (0, 0)),         # W_gen^T     (resident)
                    pl.BlockSpec((R, 1), lambda i: (0, 0)),         # beta
                    pl.BlockSpec((R, 1), lambda i: (0, 0)),         # 1 - beta
                ],
                out_specs=pl.BlockSpec((R, tm), lambda i: (0, i)),  # full-lane stores
                scratch_shapes=[pltpu.VMEM((R, Vpad_a), jnp.float32)],
            ),
            compiler_params=pltpu.CompilerParams(
                # "arbitrary": sequential on one TC so the step-0 table build in scratch
                # is visible to all later steps (standard init-once accumulator pattern).
                dimension_semantics=("arbitrary",),
                vmem_limit_bytes=vmem_limit,
            ),
            cost_estimate=cost,
        )(ids2, we_p, v_p, w_t, beta2, omb2)

        return out_t[:, :M].T.reshape(B, L, R)

    # ------------------------------------------------------------------
    # Path B (large vocab): Pallas lane-dense table kernel + XLA row gather.
    # ------------------------------------------------------------------
    tvl = max(128, (int(tile_v) // 128) * 128)
    tvl = min(tvl, _round_up(Vocab, 128))     # caps zero-row padding at < tvl rows
    Vpad_b = _round_up(Vocab, tvl)
    pad_v = Vpad_b - Vocab
    we_p = jnp.pad(we_t, ((0, 0), (0, pad_v))) if pad_v else we_t
    v_p = jnp.pad(v_t, ((0, 0), (0, pad_v))) if pad_v else v_t

    table_t = pl.pallas_call(
        functools.partial(_table_t_kernel, nonlinear=nonlinear),
        out_shape=jax.ShapeDtypeStruct((R, Vpad_b), jnp.float32),
        grid_spec=pltpu.PrefetchScalarGridSpec(
            num_scalar_prefetch=0,
            grid=(Vpad_b // tvl,),
            in_specs=[
                pl.BlockSpec((R, D), lambda i: (0, 0)),       # W_gen^T (resident)
                pl.BlockSpec((D, tvl), lambda i: (0, i)),     # word_embed^T lane tile
                pl.BlockSpec((R, tvl), lambda i: (0, i)),     # V_embed^T lane tile
                pl.BlockSpec((R, 1), lambda i: (0, 0)),       # beta
                pl.BlockSpec((R, 1), lambda i: (0, 0)),       # 1 - beta
            ],
            out_specs=pl.BlockSpec((R, tvl), lambda i: (0, i)),
        ),
        compiler_params=pltpu.CompilerParams(
            dimension_semantics=("parallel",)),
    )(w_t, we_p, v_p, beta2, omb2)

    out = jnp.take(table_t, ids, axis=1).T.astype(out_dtype)   # (M, R)
    return out.reshape(B, L, R)


def _reference(inp, max_len, word_embed, V_embed, W_gen, beta_vec, nonlinear):
    inp = inp[:, :max_len]
    emb = jnp.take(word_embed, inp, axis=0)
    v = jnp.take(V_embed, inp, axis=0)
    g = jnp.einsum("bld,dr->blr", emb, W_gen)
    g = _apply_nonlinear(g, nonlinear)
    return v * beta_vec + g * (1.0 - beta_vec)


if __name__ == "__main__":
    # small shapes: vocab=64, hidden D=32, rank R=16, batch B=2, seq L1=8
    Vocab, D, R = 64, 32, 16
    B, L1 = 2, 8
    beta = 0.5
    nonlinear = "relutanh"  # args.additional_nonlinear

    key = jax.random.PRNGKey(0)
    k1, k2, k3 = jax.random.split(key, 3)

    # deterministic "pretrained" params (module __init__ shapes)
    word_embed = jax.random.normal(k1, (Vocab, D), dtype=jnp.float32)   # embed.static_embed
    V_embed = jax.random.normal(k2, (Vocab, R), dtype=jnp.float32)      # V_embed parameter
    W_gen = jnp.matmul(jnp.linalg.pinv(word_embed), V_embed)            # embed_r_generalized (D, R)
    beta_vec = jnp.full((R,), beta, dtype=jnp.float32)                  # beta_vec parameter

    inp = jax.random.randint(k3, (B, L1), 0, Vocab, dtype=jnp.int32)
    lengths = jnp.array([L1, L1 - 3], dtype=jnp.int32)   # max == L1
    max_len = int(jax.device_get(lengths).max())         # host-side once, outside jit

    ref = _reference(inp, max_len, word_embed, V_embed, W_gen, beta_vec, nonlinear)

    # Hot path: fused lane-dense one-hot-gather kernel.
    out = embed_aggregate(inp, word_embed, V_embed, W_gen, beta_vec,
                          max_len=max_len, nonlinear=nonlinear)
    out = jax.block_until_ready(out)
    assert out.shape == ref.shape, (out.shape, ref.shape)
    np.testing.assert_allclose(np.asarray(out), np.asarray(ref), rtol=1e-5, atol=1e-5)

    # Large-vocab fallback path (Pallas table kernel + XLA gather), forced via the gate.
    out_fb = embed_aggregate(inp, word_embed, V_embed, W_gen, beta_vec,
                             max_len=max_len, nonlinear=nonlinear, max_fused_vocab=0)
    out_fb = jax.block_until_ready(out_fb)
    np.testing.assert_allclose(np.asarray(out_fb), np.asarray(ref), rtol=1e-5, atol=1e-5)

    print("KERNEL_OK")
</pallas_src>

<mosaic_0001>
module attributes {stable_mosaic.version = 11 : i64} {
  func.func @_fused_gather_kernel(%arg0: i32, %arg1: memref<1x128xi32, #tpu.memory_space<vmem>>, %arg2: memref<32x128xf32, #tpu.memory_space<vmem>>, %arg3: memref<16x128xf32, #tpu.memory_space<vmem>>, %arg4: memref<16x32xf32, #tpu.memory_space<vmem>>, %arg5: memref<16x1xf32, #tpu.memory_space<vmem>>, %arg6: memref<16x1xf32, #tpu.memory_space<vmem>>, %arg7: memref<16x128xf32, #tpu.memory_space<vmem>>, %arg8: memref<16x128xf32, #tpu.memory_space<vmem>>) attributes {dimension_semantics = [#tpu.dimension_semantics<arbitrary>], iteration_bounds = array<i64: 1>, scalar_prefetch = 0 : i64, scratch_operands = 1 : i64, tpu.core_type = #tpu.core_type<tc>, window_params = [{transform_indices = @transform_0, window_bounds = array<i64: 1, 128>}, {pipeline_mode = #tpu.pipeline_mode<synchronous>, transform_indices = @transform_1, window_bounds = array<i64: 32, 128>}, {pipeline_mode = #tpu.pipeline_mode<synchronous>, transform_indices = @transform_2, window_bounds = array<i64: 16, 128>}, {pipeline_mode = #tpu.pipeline_mode<synchronous>, transform_indices = @transform_3, window_bounds = array<i64: 16, 32>}, {pipeline_mode = #tpu.pipeline_mode<synchronous>, transform_indices = @transform_4, window_bounds = array<i64: 16, 1>}, {pipeline_mode = #tpu.pipeline_mode<synchronous>, transform_indices = @transform_5, window_bounds = array<i64: 16, 1>}, {transform_indices = @transform_6, window_bounds = array<i64: 16, 128>}]} {
    %c0_i32 = arith.constant 0 : i32
    %0 = arith.cmpi eq, %arg0, %c0_i32 : i32
    %1 = arith.extui %0 : i1 to i32
    %c0_i32_0 = arith.constant 0 : i32
    %2 = arith.cmpi ne, %1, %c0_i32_0 : i32
    scf.if %2 {
      %c0_6 = arith.constant 0 : index
      %c0_7 = arith.constant 0 : index
      %12 = vector.load %arg4[%c0_6, %c0_7] : memref<16x32xf32, #tpu.memory_space<vmem>>, vector<16x32xf32>
      %c0_8 = arith.constant 0 : index
      %c0_9 = arith.constant 0 : index
      %13 = vector.load %arg2[%c0_8, %c0_9] : memref<32x128xf32, #tpu.memory_space<vmem>>, vector<32x128xf32>
      %cst_10 = arith.constant dense<0.000000e+00> : vector<16x128xf32>
      %14 = tpu.matmul %12, %13, %cst_10 {dimension_numbers = #tpu.dot_dimension_numbers<[1], [0], [0], [1], [0, 0, 1, 1], [], []>} : vector<16x32xf32>, vector<32x128xf32>, vector<16x128xf32> -> vector<16x128xf32>
      %cst_11 = arith.constant 0.000000e+00 : f32
      %15 = vector.broadcast %cst_11 : f32 to vector<16x128xf32>
      %16 = arith.maximumf %14, %15 : vector<16x128xf32>
      %17 = math.tanh %16 : vector<16x128xf32>
      %c0_12 = arith.constant 0 : index
      %c0_13 = arith.constant 0 : index
      %18 = vector.load %arg3[%c0_12, %c0_13] : memref<16x128xf32, #tpu.memory_space<vmem>>, vector<16x128xf32>
      %c0_14 = arith.constant 0 : index
      %c0_15 = arith.constant 0 : index
      %19 = vector.load %arg5[%c0_14, %c0_15] : memref<16x1xf32, #tpu.memory_space<vmem>>, vector<16x1xf32>
      %20 = vector.broadcast %19 : vector<16x1xf32> to vector<16x128xf32>
      %21 = arith.mulf %18, %20 : vector<16x128xf32>
      %c0_16 = arith.constant 0 : index
      %c0_17 = arith.constant 0 : index
      %22 = vector.load %arg6[%c0_16, %c0_17] : memref<16x1xf32, #tpu.memory_space<vmem>>, vector<16x1xf32>
      %23 = vector.broadcast %22 : vector<16x1xf32> to vector<16x128xf32>
      %24 = arith.mulf %17, %23 : vector<16x128xf32>
      %25 = arith.addf %21, %24 : vector<16x128xf32>
      %c0_18 = arith.constant 0 : index
      %c0_19 = arith.constant 0 : index
      %26 = vector.load %arg8[%c0_18, %c0_19] : memref<16x128xf32, #tpu.memory_space<vmem>>, vector<16x128xf32>
      tpu.vector_store %arg8[%c0_18, %c0_19], %25 {strides = array<i32>} : memref<16x128xf32, #tpu.memory_space<vmem>>, vector<16x128xf32>,
    } else {
    }
    %c0 = arith.constant 0 : index
    %c0_1 = arith.constant 0 : index
    %3 = vector.load %arg1[%c0, %c0_1] : memref<1x128xi32, #tpu.memory_space<vmem>>, vector<1x128xi32>
    %4 = tpu.iota {dimensions = array<i32: 0>} : vector<128x128xi32>
    %5 = vector.broadcast %3 : vector<1x128xi32> to vector<128x128xi32>
    %6 = arith.cmpi eq, %4, %5 : vector<128x128xi32>
    %7 = arith.extui %6 : vector<128x128xi1> to vector<128x128xi32>
    %8 = arith.sitofp %7 : vector<128x128xi32> to vector<128x128xf32>
    %c0_2 = arith.constant 0 : index
    %c0_3 = arith.constant 0 : index
    %9 = vector.load %arg8[%c0_2, %c0_3] : memref<16x128xf32, #tpu.memory_space<vmem>>, vector<16x128xf32>
    %cst = arith.constant dense<0.000000e+00> : vector<16x128xf32>
    %10 = tpu.matmul %9, %8, %cst {dimension_numbers = #tpu.dot_dimension_numbers<[1], [0], [0], [1], [0, 0, 1, 1], [], []>} : vector<16x128xf32>, vector<128x128xf32>, vector<16x128xf32> -> vector<16x128xf32>
    %c0_4 = arith.constant 0 : index
    %c0_5 = arith.constant 0 : index
    %11 = vector.load %arg7[%c0_4, %c0_5] : memref<16x128xf32, #tpu.memory_space<vmem>>, vector<16x128xf32>
    tpu.vector_store %arg7[%c0_4, %c0_5], %10 {strides = array<i32>} : memref<16x128xf32, #tpu.memory_space<vmem>>, vector<16x128xf32>,
    return
  }
  func.func @transform_0(%arg0: i32) -> (i32, i32) {
    %c0_i32 = arith.constant 0 : i32
    %c0_i32_0 = arith.constant 0 : i32
    return %c0_i32, %arg0 : i32, i32
  }
  func.func @transform_1(%arg0: i32) -> (i32, i32) {
    %c0_i32 = arith.constant 0 : i32
    %c0_i32_0 = arith.constant 0 : i32
    %c0_i32_1 = arith.constant 0 : i32
    return %c0_i32, %c0_i32_0 : i32, i32
  }
  func.func @transform_2(%arg0: i32) -> (i32, i32) {
    %c0_i32 = arith.constant 0 : i32
    %c0_i32_0 = arith.constant 0 : i32
    %c0_i32_1 = arith.constant 0 : i32
    return %c0_i32, %c0_i32_0 : i32, i32
  }
  func.func @transform_3(%arg0: i32) -> (i32, i32) {
    %c0_i32 = arith.constant 0 : i32
    %c0_i32_0 = arith.constant 0 : i32
    %c0_i32_1 = arith.constant 0 : i32
    return %c0_i32, %c0_i32_0 : i32, i32
  }
  func.func @transform_4(%arg0: i32) -> (i32, i32) {
    %c0_i32 = arith.constant 0 : i32
    %c0_i32_0 = arith.constant 0 : i32
    %c0_i32_1 = arith.constant 0 : i32
    return %c0_i32, %c0_i32_0 : i32, i32
  }
  func.func @transform_5(%arg0: i32) -> (i32, i32) {
    %c0_i32 = arith.constant 0 : i32
    %c0_i32_0 = arith.constant 0 : i32
    %c0_i32_1 = arith.constant 0 : i32
    return %c0_i32, %c0_i32_0 : i32, i32
  }
  func.func @transform_6(%arg0: i32) -> (i32, i32) {
    %c0_i32 = arith.constant 0 : i32
    %c0_i32_0 = arith.constant 0 : i32
    return %c0_i32, %arg0 : i32, i32
  }
}

</mosaic_0001>

<bundles_post_ra>
// kernel: embed_aggregate.1
= control target key start
LH: loop header
LB: loop body
LE: loop exit
PB: predicated region body
PF: predicated region fallthrough
CT: control target
= control target key end

     0   :  { %vm33_vm0 = vcmask 261120   ;;  %v154_v0 = vlaneseq  ;;  %v459_v4 = vmov 0   ;;  %v460_v20 = vmov 1.0|1.0   ;;  %s579_s1 = inlined_call_operand.vmem [shape: f32[32,128], index: 1, kind: input, shape index: {}]   ;;  %s580_s3 = inlined_call_operand.vmem [shape: f32[16,32], index: 3, kind: input, shape index: {}]   ;;  %s581_s4 = inlined_call_operand.vmem [shape: f32[16,1], index: 4, kind: input, shape index: {}]   ;;  %s582_s0 = inlined_call_operand.vmem [shape: s32[1,128], index: 0, kind: input, shape index: {}]   ;;  %s583_s5 = inlined_call_operand.vmem [shape: f32[16,1], index: 5, kind: input, shape index: {}]   ;;  %s584_s2 = inlined_call_operand.vmem [shape: f32[16,128], index: 2, kind: input, shape index: {}]   ;;  %s585_s6 = inlined_call_operand.vmem [shape: f32[16,128], index: 6, kind: output, shape index: {}]  }
   0x1   :  { %v29_v1 = vld [vmem:[%s579_s1] sm:$0xff]  ;;  %v30_v2 = vld [vmem:[%s579_s1 + $0x8] sm:$0xff]  ;;  %v31_v3 = vld [vmem:[%s579_s1 + $0x10] sm:$0xff]  ;;  %453 = vset.pattern.permute.xlu0 %v459_v4  ;;  %454 = vset.pattern.permute.xlu1 %v459_v4 }
   0x2   :  { %v411_v5 = vpack.c.bf16 %v30_v2, %v29_v1  ;;  %v32_v6 = vld [vmem:[%s579_s1 + $0x18] sm:$0xff]  ;;  %v27_v7 = vld [vmem:[%s580_s3] sm:$0xff]  ;;  %v511_v8 = vshrl.u32 %v154_v0, 7  ;;  %v122_v11 = vld [vmem:[%s581_s4 + $0x8] sm:$0xff] }
   0x3   :  { %v415_v9 = vpack.c.bf16 %v32_v6, %v31_v3  ;;  %373 = vmatprep.mubr.msk.f32.mxu0 %vm33_vm0, %v27_v7  ;;  %v121_v10 = vld [vmem:[%s581_s4] sm:$0xff]  ;;  %130 = vperm.xlu1 %454, %v122_v11   ;;  %v136_v19 = vld [vmem:[%s583_s5 + $0x8] sm:$0xff] }
   0x4   :  { %412 = vmatprep.subr.bf16.mxu0 %v411_v5  ;;  %125 = vperm.xlu0 %453, %v121_v10   ;;  %v523_v12 = vld [vmem:[%s582_s0] ss:$0 sm:$0xff]  ;;  %v156_v13 = vadd.s32 8, %v511_v8  ;;  %v157_v14 = vadd.s32 16, %v511_v8  ;;  %v158_v15 = vadd.s32 24, %v511_v8  ;;  %v159_v17 = vadd.s32 32, %v511_v8 }
   0x5   :  { %414 = vmatpush3.bf16.msra.mxu0 %v411_v5  ;;  %v135_v16 = vld [vmem:[%s583_s5] sm:$0xff]  ;;  %vm175_vm1 = vcmp.eq.s32.totalorder %v511_v8, %v523_v12  ;;  %v160_v18 = vadd.s32 40, %v511_v8  ;;  %v28_v21 = vld [vmem:[%s580_s3 + $0x8] sm:$0xff]  ;;  %v161_v22 = vadd.s32 48, %v511_v8  ;;  %v162_v23 = vadd.s32 56, %v511_v8 }
   0x6   :  { %416 = vmatprep.subr.bf16.mxu0 %v415_v9  ;;  %vm176_vm2 = vcmp.eq.s32.totalorder %v156_v13, %v523_v12  ;;  %vm177_vm3 = vcmp.eq.s32.totalorder %v157_v14, %v523_v12  ;;  %vm178_vm4 = vcmp.eq.s32.totalorder %v158_v15, %v523_v12  ;;  %vm179_vm7 = vcmp.eq.s32.totalorder %v159_v17, %v523_v12  ;;  %v119_v38 = vld [vmem:[%s584_s2] sm:$0xff]  ;;  %v120_v40 = vld [vmem:[%s584_s2 + $0x8] sm:$0xff] }
   0x7   :  { %vm419_vm5 = vmpackc.low %vm176_vm2, %vm175_vm1  ;;  %144 = vperm.xlu1 %454, %v136_v19   ;;  %vm180_vm8 = vcmp.eq.s32.totalorder %v160_v18, %v523_v12  ;;  %vm181_vm10 = vcmp.eq.s32.totalorder %v161_v22, %v523_v12  ;;  %vm182_vm11 = vcmp.eq.s32.totalorder %v162_v23, %v523_v12  ;;  %v163_v24 = vadd.s32 64, %v511_v8 }
   0x8   :  { %139 = vperm.xlu0 %453, %v135_v16   ;;  %420 = vmatprep.subr.msk.bf16.mxu1 %vm419_vm5, %v460_v20  ;;  %vm423_vm6 = vmpackc.low %vm178_vm4, %vm177_vm3  ;;  %v164_v25 = vadd.s32 72, %v511_v8  ;;  %v165_v26 = vadd.s32 80, %v511_v8  ;;  %v166_v27 = vadd.s32 88, %v511_v8  ;;  %v167_v28 = vadd.s32 96, %v511_v8 }
   0x9   :  { %418 = vmatpush3.bf16.msra.mxu0 %v415_v9  ;;  %422 = vmatpush3.bf16.msk.msra.mxu1 %vm419_vm5, %v460_v20  ;;  %vm427_vm9 = vmpackc.low %vm180_vm8, %vm179_vm7  ;;  %vm183_vm13 = vcmp.eq.s32.totalorder %v163_v24, %v523_v12  ;;  %v168_v29 = vadd.s32 104, %v511_v8  ;;  %v169_v30 = vadd.s32 112, %v511_v8  ;;  %v170_v31 = vadd.s32 120, %v511_v8 }
   0xa   :  { %424 = vmatprep.subr.msk.bf16.mxu1 %vm423_vm6, %v460_v20  ;;  %vm431_vm12 = vmpackc.low %vm182_vm11, %vm181_vm10  ;;  %vm184_vm14 = vcmp.eq.s32.totalorder %v164_v25, %v523_v12  ;;  %vm186_vm1 = vcmp.eq.s32.totalorder %v166_v27, %v523_v12  ;;  %vm187_vm3 = vcmp.eq.s32.totalorder %v167_v28, %v523_v12 }
   0xb   :  { %vm435_vm15 = vmpackc.low %vm184_vm14, %vm183_vm13  ;;  %vm188_vm4 = vcmp.eq.s32.totalorder %v168_v29, %v523_v12  ;;  %vm190_vm7 = vcmp.eq.s32.totalorder %v170_v31, %v523_v12 }
   0xc   :  { %374 = vmatmul.mubr.msk.f32.vlgmr.msra.gmra.mrb[0].mxu0 %vm33_vm0, %v28_v21  ;;  %vm185_vm0 = vcmp.eq.s32.totalorder %v165_v26, %v523_v12  ;;  %vm443_vm5 = vmpackc.low %vm188_vm4, %vm187_vm3 }
   0xd   :  { %426 = vmatpush3.bf16.msk.msra.mxu1 %vm423_vm6, %v460_v20  ;;  %vm439_vm2 = vmpackc.low %vm186_vm1, %vm185_vm0  ;;  %vm189_vm6 = vcmp.eq.s32.totalorder %v169_v30, %v523_v12 }
   0xe   :  { %428 = vmatprep.subr.msk.bf16.mxu1 %vm427_vm9, %v460_v20  ;;  %vm447_vm8 = vmpackc.low %vm190_vm7, %vm189_vm6 }
  0x11   :  { %430 = vmatpush3.bf16.msk.msra.mxu1 %vm427_vm9, %v460_v20 }
  0x12   :  { %432 = vmatprep.subr.msk.bf16.mxu1 %vm431_vm12, %v460_v20 }
  0x15   :  { %434 = vmatpush3.bf16.msk.msra.mxu1 %vm431_vm12, %v460_v20 }
  0x16   :  { %436 = vmatprep.subr.msk.bf16.mxu1 %vm435_vm15, %v460_v20 }
  0x19   :  { %438 = vmatpush3.bf16.msk.msra.mxu1 %vm435_vm15, %v460_v20 }
  0x1a   :  { %440 = vmatprep.subr.msk.bf16.mxu1 %vm439_vm2, %v460_v20 }
  0x1d   :  { %442 = vmatpush3.bf16.msk.msra.mxu1 %vm439_vm2, %v460_v20 }
  0x1e   :  { %444 = vmatprep.subr.msk.bf16.mxu1 %vm443_vm5, %v460_v20 }
  0x21   :  { %446 = vmatpush3.bf16.msk.msra.mxu1 %vm443_vm5, %v460_v20 }
  0x22   :  { %448 = vmatprep.subr.msk.bf16.mxu1 %vm447_vm8, %v460_v20 }
  0x25   :  { %450 = vmatpush3.bf16.msk.msra.mxu1 %vm447_vm8, %v460_v20 }
  0x82   :  { %v131_v36 = vpop.permute.xlu1 %130 }
  0x83   :  { %v126_v37 = vpop.permute.xlu0 %125  ;;  %v134_v47 = vmul.f32 %v131_v36, %v120_v40 }
  0x84   :  { %v133_v45 = vmul.f32 %v126_v37, %v119_v38 }
  0x86   :  { %v145_v41 = vpop.permute.xlu1 %144 }
  0x87   :  { %v140_v43 = vpop.permute.xlu0 %139 }
  0xdf   :  { %v375_v32 = vpop.f32.mrb[0].mxu0 }
  0xe0   :  { %v116_v33 = vmax.f32 %v375_v32, 0.0  ;;  %v106_v34 = vpop.f32.mrb[1].mxu0 }
  0xe1   :  { %v115_v35 = vmax.f32 %v106_v34, 0.0 }
  0xe2   :  { %455 = vtanh.f32 %v116_v33 }
  0xe3   :  { %457 = vtanh.f32 %v115_v35 }
  0xec   :  { %v456_v39 = vpop.eup %455 }
  0xed   :  { %v458_v42 = vpop.eup %457  ;;  %v148_v44 = vmul.f32 %v456_v39, %v145_v41 }
  0xee   :  { %v147_v46 = vmul.f32 %v458_v42, %v140_v43 }
  0xef   :  { %v150_v49 = vadd.f32 %v148_v44, %v134_v47 }
  0xf0   :  { %v149_v48 = vadd.f32 %v147_v46, %v133_v45 }
  0xf2   :  { %408 = vmatprep.mubr.f32.mxu1 %v149_v48 }
  0xf3   :  { %409 = vmatmul.mubr.f32.vlgmr.msra.gmra.mrb[0].mxu1 %v150_v49 }
 0x1c6   :  { %v410_v50 = vpop.f32.mrb[0].mxu1 }
 0x1c7   :  { %301 = vst [vmem:[%s585_s6 + $0x8] sm:$0xff] %v410_v50  ;;  %v291_v51 = vpop.f32.mrb[1].mxu1 }
 0x1c8   :  { %300 = vst [vmem:[%s585_s6] sm:$0xff] %v291_v51 }

</bundles_post_ra>
